<compile_context>
chip_gen: v7x
topology: tpu7x:2x2x1
jax: 0.10.0
libtpu: 0.0.40
codegen_flags: <defaults>
</compile_context>

<pallas_src>
import math

import jax
import jax.numpy as jnp
from jax.experimental import pallas as pl
from jax.experimental.pallas import tpu as pltpu

LANE = 128
SUBLANE = 8


def _round_up(x: int, m: int) -> int:
    return (x + m - 1) // m * m


def _mlp_kernel(x_ref, w1_ref, b1_ref, w2_ref, b2_ref, o_ref):
    # x_ref : (TM, d_in_pad)       bf16   (batch tile, streams over grid)
    # w1_ref: (h_pad, d_in_pad)    bf16   (resident, PyTorch [out, in] layout)
    # b1_ref: (1, h_pad)           f32
    # w2_ref: (d_out_pad, h_pad)   bf16   (resident)
    # b2_ref: (1, d_out_pad)       f32
    # o_ref : (TM, d_out_pad)      f32
    x = x_ref[...]
    # x @ W1.T  (contract last dims; keeps W1's wide axis lane-dense)
    h = jax.lax.dot_general(
        x, w1_ref[...],
        dimension_numbers=(((1,), (1,)), ((), ())),
        preferred_element_type=jnp.float32,
    )
    h = jnp.maximum(h + b1_ref[...], 0.0)          # bias + ReLU on f32 accumulator
    # relu(...) @ W2.T — bf16 MXU operands, f32 accumulation.
    o = jax.lax.dot_general(
        h.astype(w2_ref.dtype), w2_ref[...],
        dimension_numbers=(((1,), (1,)), ((), ())),
        preferred_element_type=jnp.float32,
    )
    o_ref[...] = (o + b2_ref[...]).astype(o_ref.dtype)


def prepare_params(w1, b1, w2, b2, compute_dtype=jnp.bfloat16):
    """One-time prep: zero-pad feature dims to lane width and cast weights.

    w1: [hidden, d_in]  b1: [hidden]  w2: [d_out, hidden]  b2: [d_out]
    (PyTorch [out_features, in_features] layout is kept — no transpose.)
    """
    hidden, d_in = w1.shape
    d_out = w2.shape[0]
    h_pad = _round_up(hidden, LANE)
    d_in_pad = _round_up(d_in, LANE)
    d_out_pad = _round_up(d_out, LANE)

    w1p = jnp.zeros((h_pad, d_in_pad), compute_dtype).at[:hidden, :d_in].set(
        w1.astype(compute_dtype))
    b1p = jnp.zeros((1, h_pad), jnp.float32).at[0, :hidden].set(b1.astype(jnp.float32))
    w2p = jnp.zeros((d_out_pad, h_pad), compute_dtype).at[:d_out, :hidden].set(
        w2.astype(compute_dtype))
    b2p = jnp.zeros((1, d_out_pad), jnp.float32).at[0, :d_out].set(b2.astype(jnp.float32))
    return w1p, b1p, w2p, b2p


def sequential_forward(x_nchw, w1p, b1p, w2p, b2p, d_out, *,
                       tm=256, compute_dtype=jnp.bfloat16):
    """Flatten -> Linear -> ReLU -> Linear, fused in one Pallas kernel.

    x_nchw: [B, C, H, W] float32; params from `prepare_params`.
    Returns [B, d_out] float32.
    """
    B = x_nchw.shape[0]
    d_in = math.prod(x_nchw.shape[1:])
    h_pad, d_in_pad = w1p.shape
    d_out_pad = w2p.shape[0]

    # Glue: Flatten(start_dim=1), cast for the MXU, pad batch/feature dims.
    x2d = x_nchw.reshape(B, d_in).astype(compute_dtype)
    tm = max(SUBLANE, min(_round_up(tm, SUBLANE), _round_up(B, SUBLANE)))
    b_pad = _round_up(B, tm)
    if b_pad != B or d_in_pad != d_in:
        x2d = jnp.pad(x2d, ((0, b_pad - B), (0, d_in_pad - d_in)))

    grid = (b_pad // tm,)
    out = pl.pallas_call(
        _mlp_kernel,
        out_shape=jax.ShapeDtypeStruct((b_pad, d_out_pad), jnp.float32),
        grid=grid,
        in_specs=[
            pl.BlockSpec((tm, d_in_pad), lambda i: (i, 0)),       # x: streamed
            pl.BlockSpec((h_pad, d_in_pad), lambda i: (0, 0)),    # W1: resident
            pl.BlockSpec((1, h_pad), lambda i: (0, 0)),           # b1: resident
            pl.BlockSpec((d_out_pad, h_pad), lambda i: (0, 0)),   # W2: resident
            pl.BlockSpec((1, d_out_pad), lambda i: (0, 0)),       # b2: resident
        ],
        out_specs=pl.BlockSpec((tm, d_out_pad), lambda i: (i, 0)),
        compiler_params=pltpu.CompilerParams(
            dimension_semantics=("parallel",),
        ),
    )(x2d, w1p, b1p, w2p, b2p)
    return out[:B, :d_out]


def _torch_linear_init(key, out_features, in_features):
    """Deterministic init matching nn.Linear: U(-1/sqrt(in), 1/sqrt(in))."""
    kw, kb = jax.random.split(key)
    bound = 1.0 / math.sqrt(in_features)
    w = jax.random.uniform(kw, (out_features, in_features), jnp.float32, -bound, bound)
    b = jax.random.uniform(kb, (out_features,), jnp.float32, -bound, bound)
    return w, b


if __name__ == "__main__":
    key = jax.random.PRNGKey(0)
    k_x, k_l1, k_l2 = jax.random.split(key, 3)

    B, C, H, W = 2, 4, 16, 16
    d_in = C * H * W          # 1024
    hidden = 32
    d_out = 10

    x = jax.random.normal(k_x, (B, C, H, W), jnp.float32)
    w1, b1 = _torch_linear_init(k_l1, hidden, d_in)
    w2, b2 = _torch_linear_init(k_l2, d_out, hidden)

    params = prepare_params(w1, b1, w2, b2)           # one-time padding/cast
    out = sequential_forward(x, *params, d_out)
    out = jax.block_until_ready(out)
    assert out.shape == (B, d_out)

    # Reference 1: mirrors the kernel's bf16 operand rounding (f32 accumulate).
    hp = jax.lax.Precision.HIGHEST
    x2d_bf = x.reshape(B, d_in).astype(jnp.bfloat16).astype(jnp.float32)
    w1_bf = w1.astype(jnp.bfloat16).astype(jnp.float32)
    w2_bf = w2.astype(jnp.bfloat16).astype(jnp.float32)
    h_ref = jnp.maximum(jnp.dot(x2d_bf, w1_bf.T, precision=hp) + b1, 0.0)
    h_ref = h_ref.astype(jnp.bfloat16).astype(jnp.float32)
    ref_bf = jnp.dot(h_ref, w2_bf.T, precision=hp) + b2
    assert jnp.allclose(out, ref_bf, atol=2e-3, rtol=2e-3), "mismatch vs bf16-rounded ref"

    # Reference 2: pure-f32 Sequential forward (loose tolerance: bf16 operand rounding).
    x2d = x.reshape(B, d_in)
    ref_f32 = jnp.maximum(jnp.dot(x2d, w1.T, precision=hp) + b1, 0.0) @ w2.T + b2
    assert jnp.allclose(out, ref_f32, atol=3e-2, rtol=3e-2), "mismatch vs f32 ref"

    print("KERNEL_OK")
</pallas_src>

<mosaic_0001>
module attributes {stable_mosaic.version = 11 : i64} {
  func.func @_mlp_kernel(%arg0: i32, %arg1: memref<8x1024xbf16, #tpu.memory_space<vmem>>, %arg2: memref<128x1024xbf16, #tpu.memory_space<vmem>>, %arg3: memref<1x128xf32, #tpu.memory_space<vmem>>, %arg4: memref<128x128xbf16, #tpu.memory_space<vmem>>, %arg5: memref<1x128xf32, #tpu.memory_space<vmem>>, %arg6: memref<8x128xf32, #tpu.memory_space<vmem>>) attributes {dimension_semantics = [#tpu.dimension_semantics<parallel>], iteration_bounds = array<i64: 1>, scalar_prefetch = 0 : i64, scratch_operands = 0 : i64, tpu.core_type = #tpu.core_type<tc>, window_params = [{transform_indices = @transform_0, window_bounds = array<i64: 8, 1024>}, {pipeline_mode = #tpu.pipeline_mode<synchronous>, transform_indices = @transform_1, window_bounds = array<i64: 128, 1024>}, {pipeline_mode = #tpu.pipeline_mode<synchronous>, transform_indices = @transform_2, window_bounds = array<i64: 1, 128>}, {pipeline_mode = #tpu.pipeline_mode<synchronous>, transform_indices = @transform_3, window_bounds = array<i64: 128, 128>}, {pipeline_mode = #tpu.pipeline_mode<synchronous>, transform_indices = @transform_4, window_bounds = array<i64: 1, 128>}, {transform_indices = @transform_5, window_bounds = array<i64: 8, 128>}]} {
    %c0 = arith.constant 0 : index
    %c0_0 = arith.constant 0 : index
    %0 = vector.load %arg1[%c0, %c0_0] : memref<8x1024xbf16, #tpu.memory_space<vmem>>, vector<8x1024xbf16>
    %c0_1 = arith.constant 0 : index
    %c0_2 = arith.constant 0 : index
    %1 = vector.load %arg2[%c0_1, %c0_2] : memref<128x1024xbf16, #tpu.memory_space<vmem>>, vector<128x1024xbf16>
    %cst = arith.constant dense<0.000000e+00> : vector<8x128xf32>
    %2 = tpu.matmul %0, %1, %cst {dimension_numbers = #tpu.dot_dimension_numbers<[1], [1], [0], [0], [0, 0, 1, 0], [], []>} : vector<8x1024xbf16>, vector<128x1024xbf16>, vector<8x128xf32> -> vector<8x128xf32>
    %c0_3 = arith.constant 0 : index
    %c0_4 = arith.constant 0 : index
    %3 = vector.load %arg3[%c0_3, %c0_4] : memref<1x128xf32, #tpu.memory_space<vmem>>, vector<1x128xf32>
    %4 = vector.broadcast %3 : vector<1x128xf32> to vector<8x128xf32>
    %5 = arith.addf %2, %4 : vector<8x128xf32>
    %cst_5 = arith.constant 0.000000e+00 : f32
    %6 = vector.broadcast %cst_5 : f32 to vector<8x128xf32>
    %7 = arith.maximumf %5, %6 : vector<8x128xf32>
    %8 = arith.truncf %7 : vector<8x128xf32> to vector<8x128xbf16>
    %c0_6 = arith.constant 0 : index
    %c0_7 = arith.constant 0 : index
    %9 = vector.load %arg4[%c0_6, %c0_7] : memref<128x128xbf16, #tpu.memory_space<vmem>>, vector<128x128xbf16>
    %cst_8 = arith.constant dense<0.000000e+00> : vector<8x128xf32>
    %10 = tpu.matmul %8, %9, %cst_8 {dimension_numbers = #tpu.dot_dimension_numbers<[1], [1], [0], [0], [0, 0, 1, 0], [], []>} : vector<8x128xbf16>, vector<128x128xbf16>, vector<8x128xf32> -> vector<8x128xf32>
    %c0_9 = arith.constant 0 : index
    %c0_10 = arith.constant 0 : index
    %11 = vector.load %arg5[%c0_9, %c0_10] : memref<1x128xf32, #tpu.memory_space<vmem>>, vector<1x128xf32>
    %12 = vector.broadcast %11 : vector<1x128xf32> to vector<8x128xf32>
    %13 = arith.addf %10, %12 : vector<8x128xf32>
    %c0_11 = arith.constant 0 : index
    %c0_12 = arith.constant 0 : index
    %14 = vector.load %arg6[%c0_11, %c0_12] : memref<8x128xf32, #tpu.memory_space<vmem>>, vector<8x128xf32>
    tpu.vector_store %arg6[%c0_11, %c0_12], %13 {strides = array<i32>} : memref<8x128xf32, #tpu.memory_space<vmem>>, vector<8x128xf32>,
    return
  }
  func.func @transform_0(%arg0: i32) -> (i32, i32) {
    %c0_i32 = arith.constant 0 : i32
    %c0_i32_0 = arith.constant 0 : i32
    return %arg0, %c0_i32 : i32, i32
  }
  func.func @transform_1(%arg0: i32) -> (i32, i32) {
    %c0_i32 = arith.constant 0 : i32
    %c0_i32_0 = arith.constant 0 : i32
    %c0_i32_1 = arith.constant 0 : i32
    return %c0_i32, %c0_i32_0 : i32, i32
  }
  func.func @transform_2(%arg0: i32) -> (i32, i32) {
    %c0_i32 = arith.constant 0 : i32
    %c0_i32_0 = arith.constant 0 : i32
    %c0_i32_1 = arith.constant 0 : i32
    return %c0_i32, %c0_i32_0 : i32, i32
  }
  func.func @transform_3(%arg0: i32) -> (i32, i32) {
    %c0_i32 = arith.constant 0 : i32
    %c0_i32_0 = arith.constant 0 : i32
    %c0_i32_1 = arith.constant 0 : i32
    return %c0_i32, %c0_i32_0 : i32, i32
  }
  func.func @transform_4(%arg0: i32) -> (i32, i32) {
    %c0_i32 = arith.constant 0 : i32
    %c0_i32_0 = arith.constant 0 : i32
    %c0_i32_1 = arith.constant 0 : i32
    return %c0_i32, %c0_i32_0 : i32, i32
  }
  func.func @transform_5(%arg0: i32) -> (i32, i32) {
    %c0_i32 = arith.constant 0 : i32
    %c0_i32_0 = arith.constant 0 : i32
    return %arg0, %c0_i32 : i32, i32
  }
}

</mosaic_0001>

<bundles_post_ra>
// kernel: tpu_custom_call.1
= control target key start
LH: loop header
LB: loop body
LE: loop exit
PB: predicated region body
PF: predicated region fallthrough
CT: control target
= control target key end

     0   :  { %10 = vsyncpa [#allocation3], 0  ;;  %s1130_s0 = inlined_call_operand.hbm [shape: bf16[8,1024], index: 0, kind: input, shape index: {}]   ;;  %s1131_s1 = inlined_call_operand.hbm [shape: bf16[128,1024], index: 1, kind: input, shape index: {}]   ;;  %s1132_s2 = inlined_call_operand.vmem [shape: f32[1,128], index: 2, kind: input, shape index: {}]   ;;  %s1133_s3 = inlined_call_operand.hbm [shape: bf16[128,128], index: 3, kind: input, shape index: {}]   ;;  %s1134_s4 = inlined_call_operand.vmem [shape: f32[1,128], index: 4, kind: input, shape index: {}]   ;;  %s1135_s5 = inlined_call_operand.hbm [shape: f32[8,128], index: 5, kind: output, shape index: {}]  }
   0x1   :  { %11 = vsyncpa [#allocation6], 0 }
   0x2   :  { %12 = vsyncpa [#allocation4], 0  ;;  %s1015_s18 = smov [#allocation5]   ;;  %s921_s22 = scalar_lea.hbm %s1131_s1, 8192 }
   0x3   :  { %s28_s19 = sshll.u32 %s1015_s18, 4  ;;  %p922_p0 = scmp.ne.s32.totalorder %s1131_s1, %s921_s22  ;;  %s29_s19 = int_to_ptr.vmem [resolvable:$true] %s28_s19 }
   0x4   :  { %p925_p1 = scmp.lt.u32.totalorder %s921_s22, %s1131_s1 }
   0x6   :  { %p927_p2 = pnand %p925_p1, %p922_p0 }
   0x8   :  { %930 = shalt.err (!%p927_p2)
}
   0x9   :  { %s931_s27 = scalar_lea.vmem %s29_s19, 8192  ;;  %p936_p4 = scmp.lt.s32.totalorder %s29_s19, %s29_s19 }
   0xa   :  { %p932_p3 = scmp.ne.s32.totalorder %s29_s19, %s931_s27  ;;  %p937_p5 = scmp.lt.s32.totalorder %s931_s27, %s931_s27 }
   0xc   :  { %p938_p6 = por %p937_p5, %p936_p4 }
   0xe   :  { %p939_p7 = pnand %p938_p6, %p932_p3 }
  0x10   :  { %942 = shalt.err (!%p939_p7)
}
  0x11   :  { %s1016_s28 = smov 512   ;;  %s1017_s29 = smov 32  }
  0x12   :  { %34 = dma.hbm_to_vmem [thread:$0]  %s1131_s1, 8192, %s29_s19, [#allocation6], %s1016_s28, %s1016_s28, %s1017_s29  }
  0x13   :  { %s1018_s7 = smov [#allocation2]   ;;  %s1019_s9 = smov [#allocation7]  }
  0x14   :  { %s19_s8 = sshll.u32 %s1018_s7, 4  ;;  %s42_s10 = sshll.u32 %s1019_s9, 4  ;;  %s20_s8 = int_to_ptr.vmem [resolvable:$true] %s19_s8  ;;  %s43_s10 = int_to_ptr.vmem [resolvable:$true] %s42_s10 }
  0x15   :  { %s943_s13 = scalar_lea.hbm %s1130_s0, 512 }
  0x16   :  { %p944_p8 = scmp.ne.s32.totalorder %s1130_s0, %s943_s13  ;;  %p947_p9 = scmp.lt.u32.totalorder %s943_s13, %s1130_s0 }
  0x18   :  { %p949_p10 = pnand %p947_p9, %p944_p8 }
  0x1a   :  { %952 = shalt.err (!%p949_p10)
}
  0x1b   :  { %s953_s1 = scalar_lea.vmem %s20_s8, 512  ;;  %p958_p12 = scmp.lt.s32.totalorder %s20_s8, %s20_s8 }
  0x1c   :  { %p954_p11 = scmp.ne.s32.totalorder %s20_s8, %s953_s1  ;;  %p959_p13 = scmp.lt.s32.totalorder %s953_s1, %s953_s1 }
  0x1e   :  { %p960_p0 = por %p959_p13, %p958_p12 }
  0x20   :  { %p961_p1 = pnand %p960_p0, %p954_p11 }
  0x22   :  { %964 = shalt.err (!%p961_p1)
}
  0x23   :  { %22 = dma.hbm_to_vmem [thread:$0]  %s1130_s0, 512, %s20_s8, [#allocation3]  }
  0x24   :  { %s965_s22 = scalar_lea.hbm %s1133_s3, 1024 }
  0x25   :  { %p966_p2 = scmp.ne.s32.totalorder %s1133_s3, %s965_s22  ;;  %p969_p3 = scmp.lt.u32.totalorder %s965_s22, %s1133_s3 }
  0x27   :  { %p971_p4 = pnand %p969_p3, %p966_p2 }
  0x29   :  { %974 = shalt.err (!%p971_p4)
}
  0x2a   :  { %s975_s27 = scalar_lea.vmem %s43_s10, 1024  ;;  %p980_p6 = scmp.lt.s32.totalorder %s43_s10, %s43_s10 }
  0x2b   :  { %p976_p5 = scmp.ne.s32.totalorder %s43_s10, %s975_s27  ;;  %p981_p7 = scmp.lt.s32.totalorder %s975_s27, %s975_s27 }
  0x2d   :  { %p982_p8 = por %p981_p7, %p980_p6 }
  0x2f   :  { %p983_p9 = pnand %p982_p8, %p976_p5 }
  0x31   :  { %986 = shalt.err (!%p983_p9)
}
  0x32   :  { %s1020_s0 = smov 64   ;;  %s1021_s28 = smov 4  }
  0x33   :  { %48 = dma.hbm_to_vmem [thread:$0]  %s1133_s3, 1024, %s43_s10, [#allocation6], %s1020_s0, %s1020_s0, %s1021_s28  }
  0x34   :  { %1009 = dma.done.wait [#allocation3], 512  }
  0x35   :  { %1010 = vsyncadd [#allocation3], 4294966784 }
  0x36   :  { %1011 = dma.done.wait [#allocation6], 9216  }
  0x37   :  { %1012 = vsyncadd [#allocation6], 4294958080  ;;  %v66_v0 = vld [vmem:[#allocation5 + $0x8] sm:$0xff]  ;;  %v65_v13 = vld [vmem:[#allocation5] sm:$0xff]  ;;  %vm1023_vm0 = vmmov 0   ;;  %s1024_s9 = smov [#allocation8]  }
  0x38   :  { %v70_v1 = vld [vmem:[#allocation5 + $0x28] sm:$0xff]  ;;  %v69_v14 = vld [vmem:[#allocation5 + $0x20] sm:$0xff]  ;;  %v67_v60 = vld [vmem:[#allocation5 + $0x10] sm:$0xff]  ;;  %s764_s10 = sshll.u32 %s1024_s9, 4  ;;  %s765_s10 = int_to_ptr.vmem [resolvable:$true] %s764_s10 }
  0x39   :  { %v74_v2 = vld [vmem:[#allocation5 + $0x48] sm:$0xff]  ;;  %v786_v3 = vcombine.high %v66_v0, %v70_v1  ;;  %v785_v4 = vcombine.low %v66_v0, %v70_v1  ;;  %v784_v15 = vcombine.high %v65_v13, %v69_v14  ;;  %v783_v16 = vcombine.low %v65_v13, %v69_v14  ;;  %v73_v17 = vld [vmem:[#allocation5 + $0x40] sm:$0xff]  ;;  %v71_v61 = vld [vmem:[#allocation5 + $0x30] sm:$0xff]  ;;  %p992_p11 = scmp.lt.s32.totalorder %s765_s10, %s765_s10 }
  0x3a   :  { %v78_v5 = vld [vmem:[#allocation5 + $0x68] sm:$0xff]  ;;  %v77_v18 = vld [vmem:[#allocation5 + $0x60] sm:$0xff]  ;;  %v788_v63 = vcombine.high %v67_v60, %v71_v61 }
  0x3b   :  { %v794_v6 = vcombine.high %v74_v2, %v78_v5  ;;  %524 = vmatprep.subr.bf16.mxu0 %v786_v3  ;;  %v1091_v7 = vld [vmem:[#allocation2 + $0x8] sm:$0xff]  ;;  %v793_v11 = vcombine.low %v74_v2, %v78_v5  ;;  %484 = vmatprep.subr.bf16.mxu1 %v784_v15  ;;  %v792_v21 = vcombine.high %v73_v17, %v77_v18  ;;  %v81_v22 = vld [vmem:[#allocation5 + $0x80] sm:$0xff]  ;;  %v83_v15 = vld [vmem:[#allocation5 + $0x90] sm:$0xff] }
  0x3c   :  { %525 = vmatpush1.bf16.xpose.msra.mxu0 %v785_v4  ;;  %v82_v8 = vld [vmem:[#allocation5 + $0x88] sm:$0xff]  ;;  %v778_v10 = vcombine.high %v1091_v7, %v1091_v7  ;;  %485 = vmatpush1.bf16.xpose.msra.mxu1 %v783_v16  ;;  %v85_v23 = vld [vmem:[#allocation5 + $0xa0] sm:$0xff]  ;;  %v791_v26 = vcombine.low %v73_v17, %v77_v18  ;;  %v87_v16 = vld [vmem:[#allocation5 + $0xb0] sm:$0xff]  ;;  %v1022_v18 = vmov 0.0  }
  0x3d   :  { %526 = vmatprep.subr.bf16.mxu0 %v794_v6  ;;  %v86_v9 = vld [vmem:[#allocation5 + $0xa8] sm:$0xff]  ;;  %486 = vmatprep.subr.bf16.mxu1 %v792_v21  ;;  %v800_v27 = vcombine.high %v81_v22, %v85_v23  ;;  %v89_v32 = vld [vmem:[#allocation5 + $0xc0] sm:$0xff]  ;;  %v799_v34 = vcombine.low %v81_v22, %v85_v23  ;;  %v1095_v6 = vld [vmem:[#allocation2 + $0x10] sm:$0xff]  ;;  %v803_v23 = vcombine.low %v83_v15, %v87_v16 }
  0x3e   :  { %556 = vmatprep.mubr.bf16.mxu0 %v778_v10  ;;  %v802_v12 = vcombine.high %v82_v8, %v86_v9  ;;  %v90_v19 = vld [vmem:[#allocation5 + $0xc8] sm:$0xff]  ;;  %v801_v24 = vcombine.low %v82_v8, %v86_v9  ;;  %v93_v33 = vld [vmem:[#allocation5 + $0xe0] sm:$0xff]  ;;  %v75_v8 = vld [vmem:[#allocation5 + $0x50] sm:$0xff]  ;;  %v777_v10 = vcombine.low %v1091_v7, %v1091_v7  ;;  %v804_v7 = vcombine.high %v83_v15, %v87_v16 }
  0x3f   :  { %v94_v20 = vld [vmem:[#allocation5 + $0xe8] sm:$0xff]  ;;  %v808_v35 = vcombine.high %v89_v32, %v93_v33  ;;  %v97_v40 = vld [vmem:[#allocation5 + $0x100] sm:$0xff]  ;;  %v807_v42 = vcombine.low %v89_v32, %v93_v33  ;;  %v79_v9 = vld [vmem:[#allocation5 + $0x70] sm:$0xff] }
  0x40   :  { %v810_v25 = vcombine.high %v90_v19, %v94_v20  ;;  %v98_v28 = vld [vmem:[#allocation5 + $0x108] sm:$0xff]  ;;  %v809_v30 = vcombine.low %v90_v19, %v94_v20  ;;  %v101_v41 = vld [vmem:[#allocation5 + $0x120] sm:$0xff]  ;;  %v796_v13 = vcombine.high %v75_v8, %v79_v9  ;;  %v795_v17 = vcombine.low %v75_v8, %v79_v9  ;;  %v91_v21 = vld [vmem:[#allocation5 + $0xd0] sm:$0xff] }
  0x41   :  { %v102_v29 = vld [vmem:[#allocation5 + $0x128] sm:$0xff]  ;;  %v816_v43 = vcombine.high %v97_v40, %v101_v41  ;;  %v105_v48 = vld [vmem:[#allocation5 + $0x140] sm:$0xff]  ;;  %v815_v50 = vcombine.low %v97_v40, %v101_v41  ;;  %v95_v22 = vld [vmem:[#allocation5 + $0xf0] sm:$0xff] }
  0x42   :  { %v818_v31 = vcombine.high %v98_v28, %v102_v29  ;;  %v106_v36 = vld [vmem:[#allocation5 + $0x148] sm:$0xff]  ;;  %v817_v38 = vcombine.low %v98_v28, %v102_v29  ;;  %v109_v49 = vld [vmem:[#allocation5 + $0x160] sm:$0xff]  ;;  %v811_v28 = vcombine.low %v91_v21, %v95_v22  ;;  %v111_v32 = vld [vmem:[#allocation5 + $0x170] sm:$0xff] }
  0x43   :  { %v110_v37 = vld [vmem:[#allocation5 + $0x168] sm:$0xff]  ;;  %v824_v51 = vcombine.high %v105_v48, %v109_v49  ;;  %v113_v56 = vld [vmem:[#allocation5 + $0x180] sm:$0xff]  ;;  %v823_v58 = vcombine.low %v105_v48, %v109_v49  ;;  %v123_v41 = vld [vmem:[#allocation5 + $0x1d0] sm:$0xff] }
  0x44   :  { %527 = vmatpush1.bf16.xpose.msra.mxu0 %v793_v11  ;;  %487 = vmatpush1.bf16.xpose.msra.mxu1 %v791_v26  ;;  %v826_v39 = vcombine.high %v106_v36, %v110_v37  ;;  %v114_v44 = vld [vmem:[#allocation5 + $0x188] sm:$0xff]  ;;  %v825_v46 = vcombine.low %v106_v36, %v110_v37  ;;  %v117_v57 = vld [vmem:[#allocation5 + $0x1a0] sm:$0xff]  ;;  %v787_v11 = vcombine.low %v67_v60, %v71_v61  ;;  %v99_v26 = vld [vmem:[#allocation5 + $0x110] sm:$0xff] }
  0x45   :  { %528 = vmatprep.subr.bf16.mxu0 %v802_v12  ;;  %488 = vmatprep.subr.bf16.mxu1 %v800_v27  ;;  %v118_v45 = vld [vmem:[#allocation5 + $0x1a8] sm:$0xff]  ;;  %v832_v59 = vcombine.high %v113_v56, %v117_v57  ;;  %v121_v0 = vld [vmem:[#allocation5 + $0x1c0] sm:$0xff]  ;;  %v831_v3 = vcombine.low %v113_v56, %v117_v57  ;;  %v780_v12 = vcombine.high %v1095_v6, %v1095_v6  ;;  %v103_v27 = vld [vmem:[#allocation5 + $0x130] sm:$0xff] }
  0x46   :  { %v834_v47 = vcombine.high %v114_v44, %v118_v45  ;;  %v122_v52 = vld [vmem:[#allocation5 + $0x1c8] sm:$0xff]  ;;  %v833_v54 = vcombine.low %v114_v44, %v118_v45  ;;  %v125_v1 = vld [vmem:[#allocation5 + $0x1e0] sm:$0xff]  ;;  %v820_v29 = vcombine.high %v99_v26, %v103_v27  ;;  %v819_v33 = vcombine.low %v99_v26, %v103_v27  ;;  %v115_v36 = vld [vmem:[#allocation5 + $0x190] sm:$0xff] }
  0x47   :  { %v126_v53 = vld [vmem:[#allocation5 + $0x1e8] sm:$0xff]  ;;  %v61_v2 = vld [vmem:[#allocation2] sm:$0xff]  ;;  %v840_v5 = vcombine.high %v121_v0, %v125_v1  ;;  %v839_v14 = vcombine.low %v121_v0, %v125_v1  ;;  %v119_v37 = vld [vmem:[#allocation5 + $0x1b0] sm:$0xff] }
  0x48   :  { %v842_v55 = vcombine.high %v122_v52, %v126_v53  ;;  %v841_v62 = vcombine.low %v122_v52, %v126_v53  ;;  %v776_v4 = vcombine.high %v61_v2, %v61_v2  ;;  %v775_v19 = vcombine.low %v61_v2, %v61_v2  ;;  %v913_v20 = vld [vmem:[#allocation7] sm:$0xff]   ;;  %v918_v45 = vld [vmem:[#allocation7 + $0x28] sm:$0xff]   ;;  %v76_v52 = vld [vmem:[#allocation5 + $0x58] sm:$0xff] }
  0x49   :  { %v917_v40 = vld [vmem:[#allocation7 + $0x20] sm:$0xff]   ;;  %v80_v53 = vld [vmem:[#allocation5 + $0x78] sm:$0xff] }
  0x4a   :  { %516 = vmatprep.mubr.bf16.mxu1 %v776_v4  ;;  %v798_v57 = vcombine.high %v76_v52, %v80_v53  ;;  %v797_v60 = vcombine.low %v76_v52, %v80_v53  ;;  %v100_v2 = vld [vmem:[#allocation5 + $0x118] sm:$0xff]  ;;  %v774_v26 = vld [vmem:[%s1132_s2] ss:$0 sm:$0xff]  ;;  %s987_s2 = scalar_lea.vmem %s765_s10, 128 }
  0x4b   :  { %v112_v8 = vld [vmem:[#allocation5 + $0x178] sm:$0xff]  ;;  %p988_p10 = scmp.ne.s32.totalorder %s765_s10, %s987_s2  ;;  %p993_p12 = scmp.lt.s32.totalorder %s987_s2, %s987_s2 }
  0x4c   :  { %529 = vmatpush1.bf16.xpose.msra.mxu0 %v801_v24  ;;  %489 = vmatpush1.bf16.xpose.msra.mxu1 %v799_v34  ;;  %v812_v24 = vcombine.high %v91_v21, %v95_v22  ;;  %v124_v15 = vld [vmem:[#allocation5 + $0x1d8] sm:$0xff] }
  0x4d   :  { %530 = vmatprep.subr.bf16.mxu0 %v810_v25  ;;  %490 = vmatprep.subr.bf16.mxu1 %v808_v35  ;;  %v914_v25 = vld [vmem:[#allocation7 + $0x8] sm:$0xff]   ;;  %v916_v35 = vld [vmem:[#allocation7 + $0x18] sm:$0xff]   ;;  %p994_p13 = por %p993_p12, %p992_p11 }
  0x4e   :  { %v128_v16 = vld [vmem:[#allocation5 + $0x1f8] sm:$0xff] }
  0x4f   :  { %v920_v21 = vld [vmem:[#allocation7 + $0x38] sm:$0xff]   ;;  %p995_p0 = pnand %p994_p13, %p988_p10 }
  0x54   :  { %531 = vmatpush1.bf16.xpose.msra.mxu0 %v809_v30  ;;  %491 = vmatpush1.bf16.xpose.msra.mxu1 %v807_v42  ;;  %v915_v30 = vld [vmem:[#allocation7 + $0x10] sm:$0xff]  }
  0x55   :  { %532 = vmatprep.subr.bf16.mxu0 %v818_v31  ;;  %492 = vmatprep.subr.bf16.mxu1 %v816_v43  ;;  %v107_v31 = vld [vmem:[#allocation5 + $0x150] sm:$0xff]  ;;  %v835_v43 = vcombine.low %v115_v36, %v119_v37 }
  0x56   :  { %v828_v34 = vcombine.high %v107_v31, %v111_v32  ;;  %v127_v42 = vld [vmem:[#allocation5 + $0x1f0] sm:$0xff] }
  0x57   :  { %v844_v44 = vcombine.high %v123_v41, %v127_v42  ;;  %v843_v48 = vcombine.low %v123_v41, %v127_v42 }
  0x5c   :  { %533 = vmatpush1.bf16.xpose.msra.mxu0 %v817_v38  ;;  %493 = vmatpush1.bf16.xpose.msra.mxu1 %v815_v50  ;;  %v827_v38 = vcombine.low %v107_v31, %v111_v32  ;;  %v919_v50 = vld [vmem:[#allocation7 + $0x30] sm:$0xff]  }
  0x5d   :  { %534 = vmatprep.subr.bf16.mxu0 %v826_v39  ;;  %494 = vmatprep.subr.bf16.mxu1 %v824_v51  ;;  %v836_v39 = vcombine.high %v115_v36, %v119_v37  ;;  %v64_v51 = vld [vmem:[#allocation2 + $0x18] sm:$0xff] }
  0x5e   :  { %v782_v56 = vcombine.high %v64_v51, %v64_v51 }
  0x64   :  { %535 = vmatpush1.bf16.xpose.msra.mxu0 %v825_v46  ;;  %495 = vmatpush1.bf16.xpose.msra.mxu1 %v823_v58  ;;  %v68_v46 = vld [vmem:[#allocation5 + $0x18] sm:$0xff] }
  0x65   :  { %536 = vmatprep.subr.bf16.mxu0 %v834_v47  ;;  %496 = vmatprep.subr.bf16.mxu1 %v832_v59  ;;  %v72_v47 = vld [vmem:[#allocation5 + $0x38] sm:$0xff] }
  0x66   :  { %v790_v49 = vcombine.high %v68_v46, %v72_v47  ;;  %v84_v58 = vld [vmem:[#allocation5 + $0x98] sm:$0xff] }
  0x67   :  { %v88_v59 = vld [vmem:[#allocation5 + $0xb8] sm:$0xff] }
  0x68   :  { %v806_v61 = vcombine.high %v84_v58, %v88_v59  ;;  %v805_v0 = vcombine.low %v84_v58, %v88_v59 }
  0x6c   :  { %537 = vmatpush1.bf16.xpose.msra.mxu0 %v833_v54  ;;  %497 = vmatpush1.bf16.xpose.msra.mxu1 %v831_v3  ;;  %v779_v54 = vcombine.low %v1095_v6, %v1095_v6  ;;  %v104_v3 = vld [vmem:[#allocation5 + $0x138] sm:$0xff] }
  0x6d   :  { %538 = vmatprep.subr.bf16.mxu0 %v842_v55  ;;  %498 = vmatprep.subr.bf16.mxu1 %v840_v5  ;;  %v789_v55 = vcombine.low %v68_v46, %v72_v47  ;;  %v822_v5 = vcombine.high %v100_v2, %v104_v3  ;;  %v108_v6 = vld [vmem:[#allocation5 + $0x158] sm:$0xff]  ;;  %v821_v9 = vcombine.low %v100_v2, %v104_v3 }
  0x74   :  { %539 = vmatpush1.bf16.xpose.msra.mxu0 %v841_v62  ;;  %499 = vmatpush1.bf16.xpose.msra.mxu1 %v839_v14  ;;  %v92_v62 = vld [vmem:[#allocation5 + $0xd8] sm:$0xff] }
  0x75   :  { %564 = vmatprep.subr.bf16.mxu0 %v788_v63  ;;  %865 = vmatprep.subr.bf16.mxu1 %v1022_v18  ;;  %v96_v63 = vld [vmem:[#allocation5 + $0xf8] sm:$0xff] }
  0x76   :  { %v814_v1 = vcombine.high %v92_v62, %v96_v63  ;;  %v813_v4 = vcombine.low %v92_v62, %v96_v63 }
  0x7b   :  { %557 = vmatmul.mubr.bf16.vlgmr.msra.gmra.mrb[0].mxu0 %v777_v10  ;;  %517 = vmatmul.mubr.bf16.vlgmr.msra.gmra.mrb[0].mxu1 %v775_v19  ;;  %v830_v10 = vcombine.high %v108_v6, %v112_v8  ;;  %v845_v19 = vcombine.low %v124_v15, %v128_v16 }
  0x7c   :  { %565 = vmatpush1.bf16.xpose.msra.mxu0 %v787_v11  ;;  %596 = vmatprep.mubr.bf16.mxu0 %v780_v12  ;;  %v116_v11 = vld [vmem:[#allocation5 + $0x198] sm:$0xff] }
  0x7d   :  { %566 = vmatprep.subr.bf16.mxu0 %v796_v13  ;;  %866 = vmatpush3.bf16.xpose.msra.mxu1 %v913_v20  ;;  %v120_v12 = vld [vmem:[#allocation5 + $0x1b8] sm:$0xff]  ;;  %v829_v13 = vcombine.low %v108_v6, %v112_v8  ;;  %v781_v20 = vcombine.low %v64_v51, %v64_v51 }
  0x7e   :  { %867 = vmatprep.subr.bf16.mxu1 %v1022_v18  ;;  %v838_v14 = vcombine.high %v116_v11, %v120_v12  ;;  %881 = vmatprep.mubr.msk.bf16.mxu1 %vm1023_vm0, %v1022_v18 }
  0x84   :  { %567 = vmatpush1.bf16.xpose.msra.mxu0 %v795_v17  ;;  %v837_v17 = vcombine.low %v116_v11, %v120_v12 }
  0x85   :  { %568 = vmatprep.subr.bf16.mxu0 %v804_v7  ;;  %868 = vmatpush3.bf16.xpose.msra.mxu1 %v914_v25  ;;  %v846_v7 = vcombine.high %v124_v15, %v128_v16 }
  0x86   :  { %869 = vmatprep.subr.bf16.mxu1 %v1022_v18 }
  0x8c   :  { %569 = vmatpush1.bf16.xpose.msra.mxu0 %v803_v23 }
  0x8d   :  { %570 = vmatprep.subr.bf16.mxu0 %v812_v24  ;;  %870 = vmatpush3.bf16.xpose.msra.mxu1 %v915_v30 }
  0x8e   :  { %871 = vmatprep.subr.bf16.mxu1 %v1022_v18 }
  0x94   :  { %571 = vmatpush1.bf16.xpose.msra.mxu0 %v811_v28 }
  0x95   :  { %572 = vmatprep.subr.bf16.mxu0 %v820_v29  ;;  %872 = vmatpush3.bf16.xpose.msra.mxu1 %v916_v35 }
  0x96   :  { %873 = vmatprep.subr.bf16.mxu1 %v1022_v18 }
  0x9c   :  { %573 = vmatpush1.bf16.xpose.msra.mxu0 %v819_v33 }
  0x9d   :  { %574 = vmatprep.subr.bf16.mxu0 %v828_v34  ;;  %874 = vmatpush3.bf16.xpose.msra.mxu1 %v917_v40 }
  0x9e   :  { %875 = vmatprep.subr.bf16.mxu1 %v1022_v18 }
  0xa4   :  { %575 = vmatpush1.bf16.xpose.msra.mxu0 %v827_v38 }
  0xa5   :  { %576 = vmatprep.subr.bf16.mxu0 %v836_v39  ;;  %876 = vmatpush3.bf16.xpose.msra.mxu1 %v918_v45 }
  0xa6   :  { %877 = vmatprep.subr.bf16.mxu1 %v1022_v18 }
  0xac   :  { %577 = vmatpush1.bf16.xpose.msra.mxu0 %v835_v43 }
  0xad   :  { %578 = vmatprep.subr.bf16.mxu0 %v844_v44  ;;  %878 = vmatpush3.bf16.xpose.msra.mxu1 %v919_v50 }
  0xae   :  { %879 = vmatprep.subr.bf16.mxu1 %v1022_v18  ;;  %v847_v18 = vld [vmem:[%s1134_s4] ss:$0 sm:$0xff] }
  0xb4   :  { %579 = vmatpush1.bf16.xpose.msra.mxu0 %v843_v48 }
  0xb5   :  { %604 = vmatprep.subr.bf16.mxu0 %v790_v49  ;;  %880 = vmatpush3.bf16.xpose.msra.mxu1 %v920_v21 }
  0xbb   :  { %597 = vmatmul.mubr.bf16.vlgmr.msra.gmra.mrb[0].mxu0 %v779_v54 }
  0xbc   :  { %605 = vmatpush1.bf16.xpose.msra.mxu0 %v789_v55  ;;  %636 = vmatprep.mubr.bf16.mxu0 %v782_v56 }
  0xbd   :  { %606 = vmatprep.subr.bf16.mxu0 %v798_v57 }
  0xc4   :  { %607 = vmatpush1.bf16.xpose.msra.mxu0 %v797_v60 }
  0xc5   :  { %608 = vmatprep.subr.bf16.mxu0 %v806_v61 }
  0xcc   :  { %609 = vmatpush1.bf16.xpose.msra.mxu0 %v805_v0 }
  0xcd   :  { %610 = vmatprep.subr.bf16.mxu0 %v814_v1 }
  0xd4   :  { %611 = vmatpush1.bf16.xpose.msra.mxu0 %v813_v4 }
  0xd5   :  { %612 = vmatprep.subr.bf16.mxu0 %v822_v5 }
  0xdc   :  { %613 = vmatpush1.bf16.xpose.msra.mxu0 %v821_v9 }
  0xdd   :  { %614 = vmatprep.subr.bf16.mxu0 %v830_v10 }
  0xe4   :  { %615 = vmatpush1.bf16.xpose.msra.mxu0 %v829_v13 }
  0xe5   :  { %616 = vmatprep.subr.bf16.mxu0 %v838_v14 }
  0xec   :  { %617 = vmatpush1.bf16.xpose.msra.mxu0 %v837_v17 }
  0xed   :  { %618 = vmatprep.subr.bf16.mxu0 %v846_v7 }
  0xf4   :  { %619 = vmatpush1.bf16.xpose.msra.mxu0 %v845_v19 }
  0xfb   :  { %637 = vmatmul.mubr.bf16.vlgmr.msra.gmra.mrb[0].mxu0 %v781_v20 }
 0x14e   :  { %v518_v22 = vpop.f32.mrb[0].mxu1 }
 0x14f   :  { %v520_v23 = vpop.f32.mrb[1].mxu1  ;;  %v519_v27 = vadd.f32 %v774_v26, %v518_v22 }
 0x150   :  { %v521_v24 = vpop.f32.mrb[2].mxu1 }
 0x151   :  { %v522_v25 = vpop.f32.mrb[3].mxu1 }
 0x1ce   :  { %v638_v28 = vpop.f32.mrb[0].mxu0 }
 0x1cf   :  { %v886_v29 = vadd.f32 %v638_v28, %v519_v27  ;;  %v640_v30 = vpop.f32.mrb[1].mxu0 }
 0x1d0   :  { %v641_v31 = vpop.f32.mrb[2].mxu0 }
 0x1d1   :  { %v644_v32 = vmax.f32 %v886_v29, 0.0  ;;  %v642_v33 = vpop.f32.mrb[3].mxu0 }
 0x1d3   :  { %v645_v34 = vpack.c.bf16 %v644_v32, %v644_v32 }
 0x1d5   :  { %882 = vmatmul.mubr.bf16.vlgmr.msra.gmra.mrb[4].mxu1 %v645_v34 }
 0x2a8   :  { %v751_v35 = vpop.f32.mrb[4].mxu1 }
 0x2a9   :  { %v752_v36 = vadd.f32 %v847_v18, %v751_v35  ;;  %v883_v37 = vpop.f32.mrb[5].mxu1 }
 0x2aa   :  { %v754_v38 = vpop.f32.mrb[6].mxu1 }
 0x2ab   :  { %757 = vst [vmem:[#allocation8] sm:$0xff] %v752_v36  ;;  %v884_v39 = vpop.f32.mrb[7].mxu1 }
 0x2ac   :  { %998 = shalt.err (!%p995_p0)
}
 0x2ad   :  { %s999_s4 = scalar_lea.hbm %s1135_s5, 128 }
 0x2ae   :  { %p1000_p1 = scmp.ne.s32.totalorder %s1135_s5, %s999_s4  ;;  %p1003_p2 = scmp.lt.u32.totalorder %s999_s4, %s1135_s5 }
 0x2b0   :  { %p1005_p3 = pnand %p1003_p2, %p1000_p1 }
 0x2b2   :  { %1008 = shalt.err (!%p1005_p3)
}
 0x2b3   :  { %767 = dma.vmem_to_hbm [thread:$0]  %s765_s10, 128, %s1135_s5, [#allocation4]  }
 0x2b4   :  { %1013 = dma.done.wait [#allocation4], 128  }
 0x2b5   :  { %1014 = vsyncadd [#allocation4], 4294967168 }
 0x2b6   :  { %771 = vsyncpa [#allocation3], 1 }
 0x2b7   :  { %772 = vsyncpa [#allocation6], 1 }
 0x2b8   :  { %773 = vsyncpa [#allocation4], 1 }

</bundles_post_ra>
